<compile_context>
chip_gen: v7x
topology: tpu7x:2x2x1
jax: 0.10.0
libtpu: 0.0.40
codegen_flags: <defaults>
</compile_context>

<pallas_src>
import functools
import math

import jax
import jax.numpy as jnp
from jax.experimental import pallas as pl
from jax.experimental.pallas import tpu as pltpu

_SQRT_HALF = 0.7071067811865476

# Abramowitz & Stegun 7.1.26 erf constants (|err| < 1.5e-7).
_A1 = 0.254829592
_A2 = -0.284496736
_A3 = 1.421413741
_A4 = -1.453152027
_A5 = 1.061405429
_P = 0.3275911


def _gelu_erf(v):
    """Exact (erf-based) GELU matching PyTorch nn.GELU() default.

    erf via A&S 7.1.26 using only exp / mul / add / select so it lowers cleanly
    on every TPU generation.  VALU-trimmed per review:
      * 1/(1 + p|z|) goes to the EUP via pl.reciprocal(approx=True)
        (single vrcp, no Newton refinement muls) on the f32 path.
      * the erf sign is folded into one final jnp.where instead of computing a
        sign vector and multiplying.
    """
    z = v * _SQRT_HALF
    az = jnp.abs(z)
    denom = 1.0 + _P * az
    if v.dtype == jnp.float32:
        t = pl.reciprocal(denom, approx=True)      # EUP slot, effectively free
    else:
        t = 1.0 / denom                            # bf16 path (v6e/v7x opt-in)
    poly = ((((_A5 * t + _A4) * t + _A3) * t + _A2) * t + _A1) * t
    q = poly * jnp.exp(-az * az)                   # q = 1 - erf(|z|)
    # z >= 0: 1 + erf(z) = 2 - q ; z < 0: 1 + erf(z) = q
    one_plus_erf = jnp.where(z >= 0.0, 2.0 - q, q)
    return 0.5 * v * one_plus_erf
    # TODO(synk): a tanh-GELU variant would roughly halve the elementwise cost
    # but deviates ~1e-3 from nn.GELU() default semantics, so it is not used.


def graph_block_kernel(rw_ref, att1_ref, att2_ref, x_ref, o_ref, *,
                       mm_dtype, ew_dtype):
    # rw_ref:   (1,)              f32, SMEM  (ReZero resweight)
    # att1_ref: (node_n, node_n)  mm_dtype (bf16 by default)
    # att2_ref: (node_n, node_n)  mm_dtype
    # x_ref:    (node_n, tf)      f32, one batch / one feature tile (lane-dense)
    # o_ref:    (node_n, tf)
    x = x_ref[...]                       # keep f32 for the residual path
    rw = rw_ref[0]                       # ReZero scalar, read once from SMEM

    y = jnp.dot(att1_ref[...], x.astype(mm_dtype),
                preferred_element_type=jnp.float32)
    y = _gelu_erf(y.astype(ew_dtype))    # f32 default; bf16 opt-in on v6e/v7x
    # TODO(synk): nn.Dropout omitted (eval-mode identity); training-mode dropout
    # would need pltpu.prng_* and cannot reproduce PyTorch's RNG anyway.
    y = jnp.dot(att2_ref[...], y.astype(mm_dtype),
                preferred_element_type=jnp.float32)
    y = _gelu_erf(y)                     # f32 elementwise (safe on v5e)

    o_ref[...] = (x + rw * y).astype(o_ref.dtype)   # ReZero residual, fused


def _pick_feature_tile(F, batch, max_feature_tile):
    """Feature-axis tile: full F when small, else a multiple-of-128 cap.

    Uses a cdiv grid (padded last block) so divisibility of F is never
    required.  For batch == 1, split F so v7x's two TensorCores both get work
    on the parallel grid.
    """
    cap = max(128, max_feature_tile - (max_feature_tile % 128))
    tf = F if F <= cap else cap
    if batch == 1 and tf == F and F >= 256:
        tf = max(128, (F // 2) // 128 * 128)
    return tf


def graph_block_forward(x, att1, att2, resweight, *,
                        matmul_dtype=jnp.bfloat16,
                        first_gelu_dtype=jnp.float32,
                        max_feature_tile=8192):
    """Graph_Block forward.  x: (B, node_n, F) -> (B, node_n, F).

    matmul_dtype:     MXU operand dtype (bf16 default; f32 accumulation always).
    first_gelu_dtype: elementwise dtype of the GELU feeding matmul2.  Set to
                      jnp.bfloat16 on v6e/v7x (bf16 VPU) to halve its VALU
                      issue count; keep f32 on v5e.
    """
    B, node_n, F = x.shape
    assert att1.shape == (node_n, node_n)
    assert att2.shape == (node_n, node_n)

    mm_dtype = jnp.dtype(matmul_dtype)
    if att1.dtype != mm_dtype:
        att1 = att1.astype(mm_dtype)     # cast once in the wrapper: halves att DMA
        att2 = att2.astype(mm_dtype)

    rw = jnp.asarray(resweight, dtype=jnp.float32).reshape((1,))

    tf = _pick_feature_tile(F, B, max_feature_tile)
    grid = (B, pl.cdiv(F, tf))

    att_kwargs = {}
    if node_n >= 1024:
        # index_map is constant -> fetched once anyway; single-buffer so a huge
        # att matrix doesn't double its VMEM footprint (v7x: 64 MiB physical).
        att_kwargs["pipeline_mode"] = pl.Buffered(1)
    att_spec = pl.BlockSpec((node_n, node_n), lambda b, j: (0, 0), **att_kwargs)

    return pl.pallas_call(
        functools.partial(graph_block_kernel, mm_dtype=mm_dtype,
                          ew_dtype=jnp.dtype(first_gelu_dtype)),
        out_shape=jax.ShapeDtypeStruct((B, node_n, F), x.dtype),
        grid_spec=pltpu.PrefetchScalarGridSpec(
            num_scalar_prefetch=0,
            grid=grid,
            in_specs=[
                pl.BlockSpec(memory_space=pltpu.MemorySpace.SMEM),        # resweight
                att_spec,                                                 # att1
                att_spec,                                                 # att2
                pl.BlockSpec((None, node_n, tf), lambda b, j: (b, 0, j)), # x tile
            ],
            out_specs=pl.BlockSpec((None, node_n, tf), lambda b, j: (b, 0, j)),
        ),
        compiler_params=pltpu.CompilerParams(
            # (batch, feature-tile) blocks are fully independent -> both grid
            # axes parallel (megacore sharding on v7x).
            dimension_semantics=("parallel", "parallel"),
            vmem_limit_bytes=32 * 1024 * 1024,
        ),
    )(rw, att1, att2, x)


def reference(x, att1, att2, resweight):
    """Pure-JAX reference mirroring the PyTorch Graph_Block (eval mode)."""
    hi = jax.lax.Precision.HIGHEST
    y = jnp.matmul(att1, x, precision=hi)
    y = jax.nn.gelu(y, approximate=False)
    y = jnp.matmul(att2, y, precision=hi)
    y = jax.nn.gelu(y, approximate=False)
    return x + resweight * y


if __name__ == "__main__":
    # Small shapes consistent with the module defaults: node_n=48; feature dim
    # chosen lane-dense (128) so stores are unmasked even at demo size.
    batch = 2
    node_n = 48
    feat = 128
    # p_dropout is irrelevant in eval mode (identity).

    key = jax.random.PRNGKey(0)
    k_x, k_a1, k_a2 = jax.random.split(key, 3)

    # GraphLayer att init (uniform, mirroring the GCN reset_parameters convention).
    stdv = 1.0 / math.sqrt(node_n)
    att1 = jax.random.uniform(k_a1, (node_n, node_n), minval=-stdv, maxval=stdv,
                              dtype=jnp.float32)
    att2 = jax.random.uniform(k_a2, (node_n, node_n), minval=-stdv, maxval=stdv,
                              dtype=jnp.float32)
    # ReZero initializes resweight to 0.0 (output == x); use a nonzero value so
    # the graph path is actually exercised by the check.
    resweight = jnp.float32(0.5)

    x = jax.random.normal(k_x, (batch, node_n, feat), dtype=jnp.float32)

    ref = reference(x, att1, att2, resweight)

    # Default path: bf16 MXU operands, f32 accumulation + f32 elementwise.
    out = jax.block_until_ready(graph_block_forward(x, att1, att2, resweight))
    assert out.shape == (batch, node_n, feat)
    assert jnp.allclose(out, ref, atol=2e-2, rtol=2e-2)

    # f32 MXU operands (tighter numerics; the approx-EUP reciprocal inside erf
    # keeps the deviation well below this tolerance).
    out_f32 = jax.block_until_ready(
        graph_block_forward(x, att1, att2, resweight, matmul_dtype=jnp.float32))
    assert jnp.allclose(out_f32, ref, atol=2e-3, rtol=2e-3)

    print("KERNEL_OK")
</pallas_src>

<mosaic_0001>
module attributes {stable_mosaic.version = 11 : i64} {
  func.func @graph_block_kernel(%arg0: i32, %arg1: i32, %arg2: memref<1xf32, #tpu.memory_space<smem>>, %arg3: memref<48x48xbf16, #tpu.memory_space<vmem>>, %arg4: memref<48x48xbf16, #tpu.memory_space<vmem>>, %arg5: memref<1x48x128xf32, #tpu.memory_space<vmem>>, %arg6: memref<1x48x128xf32, #tpu.memory_space<vmem>>) attributes {dimension_semantics = [#tpu.dimension_semantics<parallel>, #tpu.dimension_semantics<parallel>], iteration_bounds = array<i64: 2, 1>, scalar_prefetch = 0 : i64, scratch_operands = 0 : i64, tpu.core_type = #tpu.core_type<tc>, window_params = [{transform_indices = @transform_0, window_bounds = array<i64: 1>}, {pipeline_mode = #tpu.pipeline_mode<synchronous>, transform_indices = @transform_1, window_bounds = array<i64: 48, 48>}, {pipeline_mode = #tpu.pipeline_mode<synchronous>, transform_indices = @transform_2, window_bounds = array<i64: 48, 48>}, {transform_indices = @transform_3, window_bounds = array<i64: 1, 48, 128>}, {transform_indices = @transform_4, window_bounds = array<i64: 1, 48, 128>}]} {
    %c0 = arith.constant 0 : index
    %c0_0 = arith.constant 0 : index
    %c0_1 = arith.constant 0 : index
    %0 = vector.load %arg5[%c0, %c0_0, %c0_1] : memref<1x48x128xf32, #tpu.memory_space<vmem>>, vector<1x48x128xf32>
    %1 = vector.shape_cast %0 : vector<1x48x128xf32> to vector<48x128xf32>
    %c0_2 = arith.constant 0 : index
    %2 = memref.load %arg2[%c0_2] : memref<1xf32, #tpu.memory_space<smem>>
    %c0_3 = arith.constant 0 : index
    %c0_4 = arith.constant 0 : index
    %3 = vector.load %arg3[%c0_3, %c0_4] : memref<48x48xbf16, #tpu.memory_space<vmem>>, vector<48x48xbf16>
    %4 = arith.truncf %1 : vector<48x128xf32> to vector<48x128xbf16>
    %cst = arith.constant dense<0.000000e+00> : vector<48x128xf32>
    %5 = tpu.matmul %3, %4, %cst {dimension_numbers = #tpu.dot_dimension_numbers<[1], [0], [0], [1], [0, 0, 1, 1], [], []>} : vector<48x48xbf16>, vector<48x128xbf16>, vector<48x128xf32> -> vector<48x128xf32>
    %cst_5 = arith.constant 0.707106769 : f32
    %6 = vector.broadcast %cst_5 : f32 to vector<48x128xf32>
    %7 = arith.mulf %5, %6 : vector<48x128xf32>
    %8 = math.absf %7 : vector<48x128xf32>
    %cst_6 = arith.constant 0.327591091 : f32
    %9 = vector.broadcast %cst_6 : f32 to vector<48x128xf32>
    %10 = arith.mulf %9, %8 : vector<48x128xf32>
    %cst_7 = arith.constant 1.000000e+00 : f32
    %11 = vector.broadcast %cst_7 : f32 to vector<48x128xf32>
    %12 = arith.addf %11, %10 : vector<48x128xf32>
    %13 = tpu.reciprocal %12 {approx = true} : vector<48x128xf32> -> vector<48x128xf32>
    %cst_8 = arith.constant 1.06140542 : f32
    %14 = vector.broadcast %cst_8 : f32 to vector<48x128xf32>
    %15 = arith.mulf %14, %13 : vector<48x128xf32>
    %cst_9 = arith.constant -1.45315206 : f32
    %16 = vector.broadcast %cst_9 : f32 to vector<48x128xf32>
    %17 = arith.addf %15, %16 : vector<48x128xf32>
    %18 = arith.mulf %17, %13 : vector<48x128xf32>
    %cst_10 = arith.constant 1.42141378 : f32
    %19 = vector.broadcast %cst_10 : f32 to vector<48x128xf32>
    %20 = arith.addf %18, %19 : vector<48x128xf32>
    %21 = arith.mulf %20, %13 : vector<48x128xf32>
    %cst_11 = arith.constant -0.284496725 : f32
    %22 = vector.broadcast %cst_11 : f32 to vector<48x128xf32>
    %23 = arith.addf %21, %22 : vector<48x128xf32>
    %24 = arith.mulf %23, %13 : vector<48x128xf32>
    %cst_12 = arith.constant 0.254829586 : f32
    %25 = vector.broadcast %cst_12 : f32 to vector<48x128xf32>
    %26 = arith.addf %24, %25 : vector<48x128xf32>
    %27 = arith.mulf %26, %13 : vector<48x128xf32>
    %cst_13 = arith.constant 0.000000e+00 : f32
    %28 = vector.broadcast %cst_13 : f32 to vector<48x128xf32>
    %29 = arith.subf %28, %8 : vector<48x128xf32>
    %30 = arith.mulf %29, %8 : vector<48x128xf32>
    %31 = math.exp %30 : vector<48x128xf32>
    %32 = arith.mulf %27, %31 : vector<48x128xf32>
    %cst_14 = arith.constant 0.000000e+00 : f32
    %33 = vector.broadcast %cst_14 : f32 to vector<48x128xf32>
    %34 = arith.cmpf oge, %7, %33 : vector<48x128xf32>
    %cst_15 = arith.constant 2.000000e+00 : f32
    %35 = vector.broadcast %cst_15 : f32 to vector<48x128xf32>
    %36 = arith.subf %35, %32 : vector<48x128xf32>
    %37 = arith.select %34, %36, %32 : vector<48x128xi1>, vector<48x128xf32>
    %cst_16 = arith.constant 5.000000e-01 : f32
    %38 = vector.broadcast %cst_16 : f32 to vector<48x128xf32>
    %39 = arith.mulf %38, %5 : vector<48x128xf32>
    %40 = arith.mulf %39, %37 : vector<48x128xf32>
    %c0_17 = arith.constant 0 : index
    %c0_18 = arith.constant 0 : index
    %41 = vector.load %arg4[%c0_17, %c0_18] : memref<48x48xbf16, #tpu.memory_space<vmem>>, vector<48x48xbf16>
    %42 = arith.truncf %40 : vector<48x128xf32> to vector<48x128xbf16>
    %cst_19 = arith.constant dense<0.000000e+00> : vector<48x128xf32>
    %43 = tpu.matmul %41, %42, %cst_19 {dimension_numbers = #tpu.dot_dimension_numbers<[1], [0], [0], [1], [0, 0, 1, 1], [], []>} : vector<48x48xbf16>, vector<48x128xbf16>, vector<48x128xf32> -> vector<48x128xf32>
    %cst_20 = arith.constant 0.707106769 : f32
    %44 = vector.broadcast %cst_20 : f32 to vector<48x128xf32>
    %45 = arith.mulf %43, %44 : vector<48x128xf32>
    %46 = math.absf %45 : vector<48x128xf32>
    %cst_21 = arith.constant 0.327591091 : f32
    %47 = vector.broadcast %cst_21 : f32 to vector<48x128xf32>
    %48 = arith.mulf %47, %46 : vector<48x128xf32>
    %cst_22 = arith.constant 1.000000e+00 : f32
    %49 = vector.broadcast %cst_22 : f32 to vector<48x128xf32>
    %50 = arith.addf %49, %48 : vector<48x128xf32>
    %51 = tpu.reciprocal %50 {approx = true} : vector<48x128xf32> -> vector<48x128xf32>
    %cst_23 = arith.constant 1.06140542 : f32
    %52 = vector.broadcast %cst_23 : f32 to vector<48x128xf32>
    %53 = arith.mulf %52, %51 : vector<48x128xf32>
    %cst_24 = arith.constant -1.45315206 : f32
    %54 = vector.broadcast %cst_24 : f32 to vector<48x128xf32>
    %55 = arith.addf %53, %54 : vector<48x128xf32>
    %56 = arith.mulf %55, %51 : vector<48x128xf32>
    %cst_25 = arith.constant 1.42141378 : f32
    %57 = vector.broadcast %cst_25 : f32 to vector<48x128xf32>
    %58 = arith.addf %56, %57 : vector<48x128xf32>
    %59 = arith.mulf %58, %51 : vector<48x128xf32>
    %cst_26 = arith.constant -0.284496725 : f32
    %60 = vector.broadcast %cst_26 : f32 to vector<48x128xf32>
    %61 = arith.addf %59, %60 : vector<48x128xf32>
    %62 = arith.mulf %61, %51 : vector<48x128xf32>
    %cst_27 = arith.constant 0.254829586 : f32
    %63 = vector.broadcast %cst_27 : f32 to vector<48x128xf32>
    %64 = arith.addf %62, %63 : vector<48x128xf32>
    %65 = arith.mulf %64, %51 : vector<48x128xf32>
    %cst_28 = arith.constant 0.000000e+00 : f32
    %66 = vector.broadcast %cst_28 : f32 to vector<48x128xf32>
    %67 = arith.subf %66, %46 : vector<48x128xf32>
    %68 = arith.mulf %67, %46 : vector<48x128xf32>
    %69 = math.exp %68 : vector<48x128xf32>
    %70 = arith.mulf %65, %69 : vector<48x128xf32>
    %cst_29 = arith.constant 0.000000e+00 : f32
    %71 = vector.broadcast %cst_29 : f32 to vector<48x128xf32>
    %72 = arith.cmpf oge, %45, %71 : vector<48x128xf32>
    %cst_30 = arith.constant 2.000000e+00 : f32
    %73 = vector.broadcast %cst_30 : f32 to vector<48x128xf32>
    %74 = arith.subf %73, %70 : vector<48x128xf32>
    %75 = arith.select %72, %74, %70 : vector<48x128xi1>, vector<48x128xf32>
    %cst_31 = arith.constant 5.000000e-01 : f32
    %76 = vector.broadcast %cst_31 : f32 to vector<48x128xf32>
    %77 = arith.mulf %76, %43 : vector<48x128xf32>
    %78 = arith.mulf %77, %75 : vector<48x128xf32>
    %79 = vector.broadcast %2 : f32 to vector<48x128xf32>
    %80 = arith.mulf %79, %78 : vector<48x128xf32>
    %81 = arith.addf %1, %80 : vector<48x128xf32>
    %c0_32 = arith.constant 0 : index
    %c0_33 = arith.constant 0 : index
    %c0_34 = arith.constant 0 : index
    %82 = vector.load %arg6[%c0_32, %c0_33, %c0_34] : memref<1x48x128xf32, #tpu.memory_space<vmem>>, vector<1x48x128xf32>
    %83 = vector.shape_cast %82 : vector<1x48x128xf32> to vector<48x128xf32>
    %84 = vector.shape_cast %81 : vector<48x128xf32> to vector<1x48x128xf32>
    tpu.vector_store %arg6[%c0_32, %c0_33, %c0_34], %84 {strides = array<i32>} : memref<1x48x128xf32, #tpu.memory_space<vmem>>, vector<1x48x128xf32>,
    return
  }
  func.func @transform_0(%arg0: i32, %arg1: i32) -> i32 {
    %c0_i32 = arith.constant 0 : i32
    %c0_i32_0 = arith.constant 0 : i32
    return %c0_i32 : i32
  }
  func.func @transform_1(%arg0: i32, %arg1: i32) -> (i32, i32) {
    %c0_i32 = arith.constant 0 : i32
    %c0_i32_0 = arith.constant 0 : i32
    %c0_i32_1 = arith.constant 0 : i32
    return %c0_i32, %c0_i32_0 : i32, i32
  }
  func.func @transform_2(%arg0: i32, %arg1: i32) -> (i32, i32) {
    %c0_i32 = arith.constant 0 : i32
    %c0_i32_0 = arith.constant 0 : i32
    %c0_i32_1 = arith.constant 0 : i32
    return %c0_i32, %c0_i32_0 : i32, i32
  }
  func.func @transform_3(%arg0: i32, %arg1: i32) -> (i32, i32, i32) {
    %c0_i32 = arith.constant 0 : i32
    %c0_i32_0 = arith.constant 0 : i32
    return %arg0, %c0_i32, %arg1 : i32, i32, i32
  }
  func.func @transform_4(%arg0: i32, %arg1: i32) -> (i32, i32, i32) {
    %c0_i32 = arith.constant 0 : i32
    %c0_i32_0 = arith.constant 0 : i32
    return %arg0, %c0_i32, %arg1 : i32, i32, i32
  }
}

</mosaic_0001>

<bundles_post_ra>
// kernel: tpu_custom_call.1
= control target key start
LH: loop header
LB: loop body
LE: loop exit
PB: predicated region body
PF: predicated region fallthrough
CT: control target
= control target key end

     0   :  { %s1798_s0 = inlined_call_operand.<no memory space> [shape: f32[1], index: 0, kind: input, shape index: {}]   ;;  %s1799_s1 = inlined_call_operand.hbm [shape: bf16[48,48], index: 1, kind: input, shape index: {}]   ;;  %s1800_s2 = inlined_call_operand.hbm [shape: bf16[48,48], index: 2, kind: input, shape index: {}]   ;;  %s1801_s3 = inlined_call_operand.hbm [shape: f32[2,48,128], index: 3, kind: input, shape index: {}]   ;;  %s1802_s4 = inlined_call_operand.hbm [shape: f32[2,48,128], index: 4, kind: output, shape index: {}]  }
   0x1   :  { %9 = sst [smem:[#allocation2]] %s1798_s0 }
   0x2   :  { %10 = vsyncpa [#allocation4], 0 }
   0x3   :  { %11 = vsyncpa [#allocation7], 0 }
   0x4   :  { %12 = vsyncpa [#allocation5], 0 }
   0x5   :  { %14 = vsyncpa [#allocation5 + $0x1], 0  ;;  %s1316_s17 = smov 0   ;;  %s1318_s18 = smov 0  }
   0x6   :  { %s1320_s19 = smov 0   ;;  %s1322_s20 = smov 0  }
   0x7   :  { %s1324_s21 = smov 0   ;;  %s1326_s22 = smov 0  }
   0x8 LB: > { %s1347_s0 = sadd.s32 4294967295, %s1274_s22   ;;  %s877_s23 = sadd.s32 4294967294, %s1274_s22   ;;  %s1274_s22 = sphi %s1326_s22, %s20_s22   ;;  %s1270_s21 = sphi %s1324_s21, %s1825_s21   ;;  %s1266_s20 = sphi %s1322_s20, %s1824_s20   ;;  %s1262_s19 = sphi %s1320_s19, %s1823_s19   ;;  %s1258_s18 = sphi %s1318_s18, %s1822_s18   ;;  %s1254_s17 = sphi %s1316_s17, %s1821_s17  }
   0x9   : > { %s104_s24 = sadd.s32 1, %s1262_s19  ;;  %p111_p0 = scmp.ne.s32.totalorder %s1262_s19, %s1258_s18 }
   0xa   : > { %p112_p1 = scmp.eq.s32.totalorder %s1274_s22, 0  ;;  %p117_p2 = scmp.ne.s32.totalorder %s1258_s18, %s1254_s17 }
   0xb   : > { %p1803_p3 = scmp.eq.s32.totalorder %s1347_s0, 0  ;;  %p143_p4 = scmp.eq.s32.totalorder %s1347_s0, 1 }
   0xc   : > { %p1358_p5 = por %p112_p1, %p111_p0  ;;  %p149_p6 = scmp.eq.s32.totalorder %s877_s23, 1 }
   0xd   : > { %p1364_p7 = por %p1803_p3, %p117_p2  ;;  %p1368_p8 = por %p143_p4, %p111_p0 }
   0xe   : > { %p1372_p9 = por %p149_p6, %p117_p2  ;;  %p878_p10 = scmp.ge.s32.totalorder %s1274_s22, 1 }
   0xf   : > { %s1807_s26 = scalar_select %p1364_p7, 1, 0 }
  0x10   : > { %s1808_s27 = scalar_select %p1368_p8, 1, 0 }
  0x11   : > { %s1809_s28 = scalar_select %p1372_p9, 1, 0 }
  0x12   : > { %p156_p11 = scmp.lt.s32.totalorder %s1274_s22, 3  ;;  %s1276_s30 = smov [#allocation3]  }
  0x13   : > { %s171_s5 = sshll.u32 %s1276_s30, 4  ;;  %p982_p1 = scmp.lt.s32.totalorder %s1274_s22, 2  ;;  %s1382_s5 = int_to_ptr.vmem [resolvable:$true] %s171_s5 }
  0x14   : > { %p1378_p12 = pnand %p878_p10, %p156_p11  ;;  %s1277_s7 = smov [#allocation6]  }
  0x15   : > { %s184_s8 = sshll.u32 %s1277_s7, 4  ;;  %p1396_p4 = pnand %p982_p1, %p1358_p5  ;;  %s1400_s8 = int_to_ptr.vmem [resolvable:$true] %s184_s8 }
  0x16   : > { %p965_p13 = pneg %p1378_p12  ;;  %s1098_s12 = scalar_lea.hbm %s1799_s1, 384 }
  0x17   : > { %p1099_p6 = scmp.ne.s32.totalorder %s1799_s1, %s1098_s12  ;;  %p1105_p5 = scmp.lt.u32.totalorder %s1098_s12, %s1799_s1 }
  0x18   : > { %p1390_p2 = pnand %p965_p13, %p1803_p3 }
  0x1a   : > { %p1100_p10 = pneg %p1390_p2 }
  0x1c   : > { %p1101_p11 = pnand %p1100_p10, %p1099_p6 }
  0x1e   : > { %p1102_p13 = pneg %p1101_p11 }
  0x20   : > { %p1107_p1 = pnand %p1105_p5, %p1102_p13 }
  0x22   : > { %1110 = shalt.err (!%p1107_p1)
}
  0x23   : > { %s1111_s23 = scalar_lea.vmem %s1382_s5, 384  ;;  %p1119_p8 = scmp.lt.s32.totalorder %s1382_s5, %s1382_s5 }
  0x24   : > { %p1112_p0 = scmp.ne.s32.totalorder %s1382_s5, %s1111_s23  ;;  %p1120_p6 = scmp.lt.s32.totalorder %s1111_s23, %s1111_s23 }
  0x26   : > { %p1114_p3 = pnand %p1112_p0, %p1100_p10  ;;  %p1121_p11 = por %p1120_p6, %p1119_p8 }
  0x28   : > { %p1115_p9 = pneg %p1114_p3 }
  0x2a   : > { %p1122_p7 = pnand %p1121_p11, %p1115_p9 }
  0x2c   : > { %1125 = shalt.err (!%p1122_p7)
}
  0x2d   : > { %s1278_s25 = smov 64   ;;  %s1279_s30 = smov 4  }
  0x2e   : > { %968 = dma.hbm_to_vmem [thread:$0]  (!%p1390_p2), %s1799_s1, 384, %s1382_s5, [#allocation4], %s1278_s25, %s1278_s25, %s1279_s30  }
  0x2f   : > { %s1126_s13 = scalar_lea.hbm %s1800_s2, 384 }
  0x30   : > { %p1127_p3 = scmp.ne.s32.totalorder %s1800_s2, %s1126_s13  ;;  %p1133_p9 = scmp.lt.u32.totalorder %s1126_s13, %s1800_s2 }
  0x32   : > { %p1129_p7 = pnand %p1127_p3, %p1100_p10 }
  0x34   : > { %p1130_p8 = pneg %p1129_p7 }
  0x36   : > { %p1135_p0 = pnand %p1133_p9, %p1130_p8 }
  0x38   : > { %1138 = shalt.err (!%p1135_p0)
}
  0x39   : > { %s1139_s5 = scalar_lea.vmem %s1400_s8, 384  ;;  %p1147_p6 = scmp.lt.s32.totalorder %s1400_s8, %s1400_s8 }
  0x3a   : > { %p1140_p13 = scmp.ne.s32.totalorder %s1400_s8, %s1139_s5  ;;  %p1148_p11 = scmp.lt.s32.totalorder %s1139_s5, %s1139_s5 }
  0x3c   : > { %p1142_p5 = pnand %p1140_p13, %p1100_p10  ;;  %p1149_p3 = por %p1148_p11, %p1147_p6 }
  0x3e   : > { %p1143_p1 = pneg %p1142_p5 }
  0x40   : > { %p1150_p7 = pnand %p1149_p3, %p1143_p1 }
  0x42   : > { %1153 = shalt.err (!%p1150_p7)
}
  0x43   : > { %971 = dma.hbm_to_vmem [thread:$0]  (!%p1390_p2), %s1800_s2, 384, %s1400_s8, [#allocation7], %s1278_s25, %s1278_s25, %s1279_s30  }
  0x44   : > { %s32_s11 = sadd.s32 1, %s1270_s21  ;;  %s198_s12 = sand.u32 1, %s1274_s22  }
  0x45   : > { %p34_p10 = scmp.ge.s32.totalorder %s32_s11, 2  ;;  %s200_s13 = sand.u32 1, %s1262_s19  }
  0x46   : > { %s950_s14 = smul.u32 768, %s1270_s21  ;;  %s1474_s7 = scalar_lea.sflag [#allocation4], %s198_s12 }
  0x47   : > { %s1827_s11 = smov (%p34_p10, %s32_s11), 0  ;;  %s949_s6 = smul.u32 48, %s200_s13 }
  0x48   : > { %s1463_s23 = scalar_lea.hbm %s1801_s3, %s950_s14  ;;  %s99_s8 = ssub.s32 %s1270_s21, %s1827_s11 }
  0x49   : > { %p102_p2 = scmp.eq.s32.totalorder %s99_s8, 0  ;;  %s202_s25 = scalar_lea.vmem [#allocation8], %s949_s6 }
  0x4a   : > { %s210_s30 = sshll.u32 %s202_s25, 4  ;;  %s1154_s10 = scalar_lea.hbm %s1463_s23, 768  ;;  %s1472_s30 = int_to_ptr.vmem [resolvable:$true] %s210_s30 }
  0x4b   : > { %s1470_s5 = scalar_select %p102_p2, %s1262_s19, %s104_s24  }
  0x4c   : > { %p1155_p8 = scmp.ne.s32.totalorder %s1463_s23, %s1154_s10  ;;  %p1156_p9 = pneg %p1396_p4 }
  0x4d   : > { %s1159_s6 = scalar_lea.hbm %s1801_s3, 1536  ;;  %p1160_p5 = scmp.lt.u32.totalorder %s1463_s23, %s1801_s3 }
  0x4e   : > { %p1157_p0 = pnand %p1156_p9, %p1155_p8  ;;  %p1161_p1 = scmp.lt.u32.totalorder %s1159_s6, %s1154_s10 }
  0x4f   : > { %p1163_p11 = scmp.lt.u32.totalorder %s1154_s10, %s1463_s23 }
  0x50   : > { %p1158_p13 = pneg %p1157_p0  ;;  %p1162_p6 = por %p1161_p1, %p1160_p5 }
  0x52   : > { %p1164_p3 = por %p1163_p11, %p1162_p6 }
  0x54   : > { %p1165_p7 = pnand %p1164_p3, %p1158_p13 }
  0x56   : > { %1168 = shalt.err (!%p1165_p7)
}
  0x57   : > { %s1169_s24 = scalar_lea.vmem %s1472_s30, 768  ;;  %s1280_s12 = smov [#allocation8]  }
  0x58   : > { %p1170_p10 = scmp.ne.s32.totalorder %s1472_s30, %s1169_s24  ;;  %s1174_s8 = sshll.u32 %s1280_s12, 4  ;;  %s1175_s8 = int_to_ptr.vmem [resolvable:$false] %s1174_s8 }
  0x59   : > { %s1176_s25 = scalar_lea.vmem %s1175_s8, 1536  ;;  %p1177_p0 = scmp.lt.s32.totalorder %s1472_s30, %s1175_s8 }
  0x5a   : > { %p1172_p2 = pnand %p1170_p10, %p1156_p9  ;;  %p1178_p5 = scmp.lt.s32.totalorder %s1176_s25, %s1169_s24 }
  0x5c   : > { %p1173_p8 = pneg %p1172_p2  ;;  %p1179_p1 = por %p1178_p5, %p1177_p0 }
  0x5e   : > { %p1180_p6 = pnand %p1179_p1, %p1173_p8 }
  0x60   : > { %1183 = shalt.err (!%p1180_p6)
}
  0x61   : > { %s1281_s10 = smov 128   ;;  %s1282_s13 = smov 8  }
  0x62   : > { %975 = dma.hbm_to_vmem [thread:$0]  (!%p1396_p4), %s1463_s23, 768, %s1472_s30, %s1474_s7, %s1281_s10, %s1281_s10, %s1282_s13  }
  0x63   : > { %222 = sbr.rel (%p1378_p12) target bundleno = 703 (0x2bf), region = 36  ;;  %p1813_p9 = scmp.eq.s32.totalorder (!%p1378_p12), %s1347_s0, 0 }
  0x6a   : > { %1237 = dma.done.wait (%p1813_p9), [#allocation4], 384   ;;  %p1814_p13 = pmov %p1813_p9 }
  0x6b   : > { %p1815_p11 = pmov %p1813_p9 }
  0x6c   : > { %1239 = vsyncadd (%p1814_p13), [#allocation4], 4294966912 }
  0x6d   : > { %1241 = dma.done.wait (%p1815_p11), [#allocation7], 384   ;;  %p1816_p3 = pmov %p1813_p9 }
  0x6e   : > { %s232_s9 = sand.u32 1, %s1347_s0   ;;  %s234_s23 = sand.u32 1, %s1258_s18  }
  0x6f   : > { %1243 = vsyncadd (%p1816_p3), [#allocation7], 4294966912  ;;  %s1516_s29 = smul.u32 48, %s234_s23  ;;  %s233_s30 = scalar_lea.sflag [#allocation4], %s232_s9 }
  0x70   : > { %p1817_p12 = scmp.ne.s32.totalorder %s1807_s26, 0 }
  0x71   : > { %s236_s7 = scalar_lea.vmem [#allocation8], %s1516_s29 }
  0x72   : > { %1245 = dma.done.wait (%p1817_p12), %s233_s30, 768  }
  0x73   : > { %1247 = vsyncadd (%p1817_p12), %s233_s30, 4294966528  ;;  %v1283_v0 = vmov 0.0   ;;  %vm1284_vm0 = vmmov 0   ;;  %v1529_v1 = vld [vmem:[%s236_s7] sm:$0xff]  ;;  %v1531_v2 = vld [vmem:[%s236_s7 + $0x8] sm:$0xff]  ;;  %vm293_vm1 = vcmask 392192  }
  0x74   : > { %913 = vmatprep.subr.bf16.mxu0 %v1283_v0  ;;  %919 = vmatprep.mubr.msk.bf16.mxu0 %vm1284_vm0, %v1283_v0  ;;  %v1533_v3 = vld [vmem:[%s236_s7 + $0x10] sm:$0xff]  ;;  %v275_v4 = vpack.c.bf16 %v1531_v2, %v1529_v1  ;;  %v1537_v5 = vld [vmem:[%s236_s7 + $0x18] sm:$0xff]  ;;  %v1541_v7 = vld [vmem:[%s236_s7 + $0x20] sm:$0xff]  ;;  %s268_s0 = sld [smem:[#allocation2]]  ;;  %s1712_s26 = scalar_lea.vmem [#allocation9], %s1516_s29 }
  0x75   : > { %931 = vmatprep.subr.bf16.mxu1 %v1283_v0  ;;  %937 = vmatprep.mubr.msk.bf16.mxu1 %vm1284_vm0, %v1283_v0  ;;  %v276_v6 = vpack.c.bf16 %v1537_v5, %v1533_v3  ;;  %v1544_v8 = vld [vmem:[%s236_s7 + $0x28] sm:$0xff]  ;;  %v1044_v10 = vld [vmem:[#allocation3] sm:$0xff]   ;;  %v1046_v12 = vld [vmem:[#allocation3 + $0x10] sm:$0xff]   ;;  %s952_s14 = smul.u32 768, %s1266_s20  ;;  %s772_s6 = sshll.u32 %s1712_s26, 4  ;;  %s1745_s6 = int_to_ptr.vmem [resolvable:$true] %s772_s6 }
  0x76   : > { %914 = vmatpush3.bf16.msra.mxu0 %v275_v4  ;;  %v277_v9 = vpack.c.bf16 %v1544_v8, %v1541_v7  ;;  %v1045_v11 = vld [vmem:[#allocation3 + $0x8] sm:$0xff]   ;;  %s1751_s20 = scalar_lea.sflag [#allocation5], %s234_s23  ;;  %s1184_s12 = scalar_lea.vmem %s1745_s6, 768 }
  0x77   : > { %915 = vmatprep.subr.bf16.mxu0 %v1283_v0  ;;  %s1743_s24 = scalar_lea.hbm %s1802_s4, %s952_s14  ;;  %p1185_p4 = scmp.ne.s32.totalorder %s1745_s6, %s1184_s12 }
  0x78   : > { %p1818_p7 = scmp.ne.s32.totalorder %s1808_s27, 0  ;;  %s1285_s8 = smov [#allocation9]  }
  0x79   : > { %s1188_s25 = sshll.u32 %s1285_s8, 4  ;;  %s1189_s25 = int_to_ptr.vmem [resolvable:$false] %s1188_s25 }
  0x7a   : > { %916 = vmatpush3.bf16.msra.mxu0 %v276_v6  ;;  %p1186_p10 = pnand %p1185_p4, %p1818_p7  ;;  %s1190_s10 = scalar_lea.vmem %s1189_s25, 1536 }
  0x7b   : > { %917 = vmatprep.subr.bf16.mxu0 %v1283_v0  ;;  %p1191_p8 = scmp.lt.s32.totalorder %s1745_s6, %s1189_s25  ;;  %p1192_p0 = scmp.lt.s32.totalorder %s1190_s10, %s1184_s12 }
  0x7c   : > { %p1187_p2 = pneg %p1186_p10 }
  0x7d   : > { %p1193_p5 = por %p1192_p0, %p1191_p8 }
  0x7e   : > { %918 = vmatpush3.bf16.msra.mxu0 %v277_v9 }
  0x7f   : > { %p1194_p1 = pnand %p1193_p5, %p1187_p2 }
  0x81   : > { %920 = vmatmul.mubr.msk.bf16.vlgmr.msra.gmra.mrb[0].mxu0 %vm293_vm1, %v1044_v10 }
  0x82   : > { %923 = vmatprep.mubr.msk.bf16.mxu0 %vm1284_vm0, %v1283_v0 }
  0x89   : > { %924 = vmatmul.mubr.msk.bf16.gmra.mrb[4].mxu0 %vm293_vm1, %v1045_v11 }
  0x8a   : > { %927 = vmatprep.mubr.msk.bf16.mxu0 %vm1284_vm0, %v1283_v0 }
  0x91   : > { %928 = vmatmul.mubr.msk.bf16.gmra.mrb[8].mxu0 %vm293_vm1, %v1046_v12 }
 0x154   : > { %v1556_v13 = vpop.f32.mrb[0].mxu0 }
 0x155   : > { %v1559_v14 = vmul.f32 0.70710677, %v1556_v13  ;;  %v921_v15 = vpop.f32.mrb[1].mxu0 }
 0x156   : > { %v1561_v16 = vpop.f32.mrb[2].mxu0 }
 0x157   : > { %v366_v17 = vand.u32 2147483647, %v1559_v14  ;;  %v1565_v18 = vmul.f32 0.70710677, %v1561_v16  ;;  %v922_v19 = vpop.f32.mrb[3].mxu0  ;;  %vm474_vm2 = vcmp.ge.f32.partialorder %v1559_v14, 0.0 }
 0x159   : > { %v372_v20 = vmul.f32 0.3275911, %v366_v17  ;;  %v367_v21 = vand.u32 2147483647, %v1565_v18  ;;  %v444_v34 = vsub.f32 0.0, %v366_v17  ;;  %vm475_vm3 = vcmp.ge.f32.partialorder %v1565_v18, 0.0 }
 0x15b   : > { %v378_v22 = vadd.f32 1.0, %v372_v20  ;;  %v373_v23 = vmul.f32 0.3275911, %v367_v21  ;;  %v445_v41 = vsub.f32 0.0, %v367_v21  ;;  %v450_v44 = vmul.f32 %v444_v34, %v366_v17 }
 0x15c   : > { %v1568_v24 = vpop.f32.mrb[4].mxu0 }
 0x15d   : > { %1050 = vrcp.f32 %v378_v22  ;;  %v379_v25 = vadd.f32 1.0, %v373_v23  ;;  %v925_v26 = vpop.f32.mrb[5].mxu0  ;;  %v1571_v27 = vmul.f32 0.70710677, %v1568_v24  ;;  %v451_v51 = vmul.f32 %v445_v41, %v367_v21 }
 0x15e   : > { %v1573_v28 = vpop.f32.mrb[6].mxu0  ;;  %v456_v54 = vmul.f32 1.442695, %v450_v44 }
 0x15f   : > { %v1576_v29 = vmul.f32 0.70710677, %v1573_v28  ;;  %v926_v30 = vpop.f32.mrb[7].mxu0  ;;  %1052 = vrcp.f32 %v379_v25  ;;  %v368_v31 = vand.u32 2147483647, %v1571_v27  ;;  %vm476_vm4 = vcmp.ge.f32.partialorder %v1571_v27, 0.0 }
 0x160   : > { %v458_v62 = vmul.f32 1.442695, %v451_v51 }
 0x161   : > { %v369_v32 = vand.u32 2147483647, %v1576_v29  ;;  %v374_v33 = vmul.f32 0.3275911, %v368_v31  ;;  %v446_v57 = vsub.f32 0.0, %v368_v31  ;;  %vm477_vm5 = vcmp.ge.f32.partialorder %v1576_v29, 0.0 }
 0x163   : > { %v375_v35 = vmul.f32 0.3275911, %v369_v32  ;;  %v380_v36 = vadd.f32 1.0, %v374_v33  ;;  %v447_v60 = vsub.f32 0.0, %v369_v32  ;;  %v452_v10 = vmul.f32 %v446_v57, %v368_v31 }
 0x164   : > { %v1580_v37 = vpop.f32.mrb[8].mxu0 }
 0x165   : > { %v381_v38 = vadd.f32 1.0, %v375_v35  ;;  %v1583_v39 = vmul.f32 0.70710677, %v1580_v37  ;;  %v929_v40 = vpop.f32.mrb[9].mxu0  ;;  %1054 = vrcp.f32 %v380_v36  ;;  %v453_v17 = vmul.f32 %v447_v60, %v369_v32 }
 0x166   : > { %v1585_v42 = vpop.f32.mrb[10].mxu0  ;;  %v460_v26 = vmul.f32 1.442695, %v452_v10 }
 0x167   : > { %v1051_v43 = vpop.eup %1050  ;;  %1056 = vrcp.f32 %v381_v38  ;;  %v370_v45 = vand.u32 2147483647, %v1583_v39  ;;  %v930_v46 = vpop.f32.mrb[11].mxu0  ;;  %v1589_v47 = vmul.f32 0.70710677, %v1585_v42  ;;  %vm478_vm6 = vcmp.ge.f32.partialorder %v1583_v39, 0.0 }
 0x168   : > { %v390_v48 = vmul.f32 1.0614054, %v1051_v43  ;;  %v462_v34 = vmul.f32 1.442695, %v453_v17  ;;  %v1048_v39 = vld [vmem:[#allocation6 + $0x8] sm:$0xff]  }
 0x169   : > { %v376_v49 = vmul.f32 0.3275911, %v370_v45  ;;  %v1053_v50 = vpop.eup %1052  ;;  %v371_v52 = vand.u32 2147483647, %v1589_v47  ;;  %v448_v21 = vsub.f32 0.0, %v370_v45  ;;  %vm479_vm7 = vcmp.ge.f32.partialorder %v1589_v47, 0.0 }
 0x16a   : > { %v396_v53 = vadd.f32 -1.4531521, %v390_v48  ;;  %v391_v56 = vmul.f32 1.0614054, %v1053_v50 }
 0x16b   : > { %v382_v55 = vadd.f32 1.0, %v376_v49  ;;  %v377_v58 = vmul.f32 0.3275911, %v371_v52  ;;  %v449_v35 = vsub.f32 0.0, %v371_v52  ;;  %v454_v40 = vmul.f32 %v448_v21, %v370_v45 }
 0x16c   : > { %v402_v59 = vmul.f32 %v1051_v43, %v396_v53  ;;  %v397_v61 = vadd.f32 -1.4531521, %v391_v56 }
 0x16d   : > { %1058 = vrcp.f32 %v382_v55  ;;  %v383_v63 = vadd.f32 1.0, %v377_v58  ;;  %v455_v55 = vmul.f32 %v449_v35, %v371_v52 }
 0x16e   : > { %v408_v4 = vadd.f32 1.4214138, %v402_v59  ;;  %1060 = vpow2.f32 %v456_v54  ;;  %v403_v6 = vmul.f32 %v1053_v50, %v397_v61  ;;  %v464_v59 = vmul.f32 1.442695, %v454_v40 }
 0x16f   : > { %v1592_v9 = vpop.eup %1054  ;;  %1062 = vrcp.f32 %v383_v63  ;;  %v466_v17 = vmul.f32 1.442695, %v455_v55  ;;  %v495_v55 = vmul.f32 0.5, %v1573_v28 }
 0x170   : > { %v414_v11 = vmul.f32 %v1051_v43, %v408_v4  ;;  %v392_v15 = vmul.f32 1.0614054, %v1592_v9  ;;  %v409_v19 = vadd.f32 1.4214138, %v403_v6  ;;  %1064 = vpow2.f32 %v458_v62 }
 0x171   : > { %v1594_v12 = vpop.eup %1056  ;;  %1066 = vpow2.f32 %v460_v26 }
 0x172   : > { %v393_v20 = vmul.f32 1.0614054, %v1594_v12  ;;  %v420_v22 = vadd.f32 -0.28449672, %v414_v11  ;;  %v398_v23 = vadd.f32 -1.4531521, %v392_v15  ;;  %v415_v25 = vmul.f32 %v1053_v50, %v409_v19 }
 0x173   : > { %1068 = vpow2.f32 %v462_v34 }
 0x174   : > { %v399_v30 = vadd.f32 -1.4531521, %v393_v20  ;;  %v426_v33 = vmul.f32 %v1051_v43, %v420_v22  ;;  %v404_v31 = vmul.f32 %v1592_v9, %v398_v23  ;;  %v421_v36 = vadd.f32 -0.28449672, %v415_v25 }
 0x175   : > { %1070 = vpow2.f32 %v464_v59  ;;  %v493_v25 = vmul.f32 0.5, %v1561_v16 }
 0x176   : > { %v405_v38 = vmul.f32 %v1594_v12, %v399_v30  ;;  %v432_v32 = vadd.f32 0.2548296, %v426_v33  ;;  %v410_v44 = vadd.f32 1.4214138, %v404_v31  ;;  %v427_v46 = vmul.f32 %v1053_v50, %v421_v36 }
 0x177   : > { %v1600_v41 = vpop.eup %1058  ;;  %1072 = vpow2.f32 %v466_v17  ;;  %v1047_v17 = vld [vmem:[#allocation6] sm:$0xff]  }
 0x178   : > { %v411_v48 = vadd.f32 1.4214138, %v405_v38  ;;  %v394_v49 = vmul.f32 1.0614054, %v1600_v41  ;;  %v438_v51 = vmul.f32 %v1051_v43, %v432_v32  ;;  %v1061_v53 = vpop.eup %1060  ;;  %v416_v54 = vmul.f32 %v1592_v9, %v410_v44 }
 0x179   : > { %v433_v56 = vadd.f32 0.2548296, %v427_v46  ;;  %v1604_v57 = vpop.eup %1062  ;;  %v492_v43 = vmul.f32 0.5, %v1556_v13 }
 0x17a   : > { %v417_v45 = vmul.f32 %v1594_v12, %v411_v48  ;;  %v400_v58 = vadd.f32 -1.4531521, %v394_v49  ;;  %v468_v60 = vmul.f32 %v1061_v53, %v438_v51  ;;  %v422_v61 = vadd.f32 -0.28449672, %v416_v54  ;;  %v1065_v4 = vpop.eup %1064 }
 0x17b   : > { %v395_v62 = vmul.f32 1.0614054, %v1604_v57  ;;  %v439_v63 = vmul.f32 %v1053_v50, %v433_v56  ;;  %v1067_v34 = vpop.eup %1066 }
 0x17c   : > { %v423_v6 = vadd.f32 -0.28449672, %v417_v45  ;;  %v406_v10 = vmul.f32 %v1600_v41, %v400_v58  ;;  %v480_v11 = vsub.f32 2.0, %v468_v60  ;;  %v428_v52 = vmul.f32 %v1592_v9, %v422_v61 }
 0x17d   : > { %v401_v15 = vadd.f32 -1.4531521, %v395_v62  ;;  %v469_v19 = vmul.f32 %v1065_v4, %v439_v63  ;;  %v1069_v32 = vpop.eup %1068 }
 0x17e   : > { %v429_v20 = vmul.f32 %v1594_v12, %v423_v6  ;;  %v412_v21 = vadd.f32 1.4214138, %v406_v10  ;;  %v434_v22 = vadd.f32 0.2548296, %v428_v52  ;;  %v486_v13 = vsel %vm474_vm2, %v480_v11, %v468_v60 }
 0x17f   : > { %v407_v50 = vmul.f32 %v1604_v57, %v401_v15  ;;  %v481_v23 = vsub.f32 2.0, %v469_v19  ;;  %v498_v38 = vmul.f32 %v492_v43, %v486_v13  ;;  %v1071_v45 = vpop.eup %1070  ;;  %v496_v10 = vmul.f32 0.5, %v1580_v37  ;;  %v1049_v37 = vld [vmem:[#allocation6 + $0x10] sm:$0xff]  }
 0x180   : > { %v435_v26 = vadd.f32 0.2548296, %v429_v20  ;;  %v418_v30 = vmul.f32 %v1600_v41, %v412_v21  ;;  %v440_v33 = vmul.f32 %v1592_v9, %v434_v22  ;;  %v494_v9 = vmul.f32 0.5, %v1568_v24 }
 0x181   : > { %v413_v31 = vadd.f32 1.4214138, %v407_v50  ;;  %v487_v14 = vsel %vm475_vm3, %v481_v23, %v469_v19  ;;  %v1073_v62 = vpop.eup %1072 }
 0x182   : > { %v441_v35 = vmul.f32 %v1594_v12, %v435_v26  ;;  %v424_v36 = vadd.f32 -0.28449672, %v418_v30  ;;  %v499_v40 = vmul.f32 %v493_v25, %v487_v14  ;;  %v470_v44 = vmul.f32 %v1067_v34, %v440_v33 }
 0x183   : > { %v419_v18 = vmul.f32 %v1604_v57, %v413_v31 }
 0x184   : > { %v471_v46 = vmul.f32 %v1069_v32, %v441_v35  ;;  %v430_v16 = vmul.f32 %v1600_v41, %v424_v36  ;;  %v510_v48 = vpack.c.bf16 %v499_v40, %v498_v38  ;;  %v482_v49 = vsub.f32 2.0, %v470_v44 }
 0x185   : > { %v425_v51 = vadd.f32 -0.28449672, %v419_v18 }
 0x186   : > { %v483_v53 = vsub.f32 2.0, %v471_v46  ;;  %v436_v54 = vadd.f32 0.2548296, %v430_v16  ;;  %932 = vmatpush3.bf16.msra.mxu1 %v510_v48  ;;  %v488_v12 = vsel %vm476_vm4, %v482_v49, %v470_v44 }
 0x187   : > { %v431_v56 = vmul.f32 %v1604_v57, %v425_v51  ;;  %933 = vmatprep.subr.bf16.mxu1 %v1283_v0  ;;  %v500_v60 = vmul.f32 %v494_v9, %v488_v12 }
 0x188   : > { %v489_v58 = vsel %vm477_vm5, %v483_v53, %v471_v46  ;;  %v442_v59 = vmul.f32 %v1600_v41, %v436_v54  ;;  %v497_v41 = vmul.f32 0.5, %v1585_v42 }
 0x189   : > { %v501_v27 = vmul.f32 %v495_v55, %v489_v58  ;;  %v437_v61 = vadd.f32 0.2548296, %v431_v56 }
 0x18a   : > { %v472_v24 = vmul.f32 %v1071_v45, %v442_v59 }
 0x18b   : > { %v443_v63 = vmul.f32 %v1604_v57, %v437_v61  ;;  %v511_v4 = vpack.c.bf16 %v501_v27, %v500_v60 }
 0x18c   : > { %v484_v43 = vsub.f32 2.0, %v472_v24 }
 0x18d   : > { %v473_v29 = vmul.f32 %v1073_v62, %v443_v63  ;;  %934 = vmatpush3.bf16.msra.mxu1 %v511_v4 }
 0x18e   : > { %935 = vmatprep.subr.bf16.mxu1 %v1283_v0  ;;  %v490_v28 = vsel %vm478_vm6, %v484_v43, %v472_v24 }
 0x18f   : > { %v485_v6 = vsub.f32 2.0, %v473_v29  ;;  %v502_v52 = vmul.f32 %v496_v10, %v490_v28 }
 0x191   : > { %v491_v11 = vsel %vm479_vm7, %v485_v6, %v473_v29 }
 0x192   : > { %v503_v15 = vmul.f32 %v497_v41, %v491_v11 }
 0x194   : > { %v512_v57 = vpack.c.bf16 %v503_v15, %v502_v52 }
 0x196   : > { %936 = vmatpush3.bf16.msra.mxu1 %v512_v57 }
 0x199   : > { %938 = vmatmul.mubr.msk.bf16.vlgmr.msra.gmra.mrb[0].mxu1 %vm293_vm1, %v1047_v17 }
 0x19a   : > { %941 = vmatprep.mubr.msk.bf16.mxu1 %vm1284_vm0, %v1283_v0 }
 0x1a1   : > { %942 = vmatmul.mubr.msk.bf16.gmra.mrb[4].mxu1 %vm293_vm1, %v1048_v39 }
 0x1a2   : > { %945 = vmatprep.mubr.msk.bf16.mxu1 %vm1284_vm0, %v1283_v0 }
 0x1a9   : > { %946 = vmatmul.mubr.msk.bf16.gmra.mrb[8].mxu1 %vm293_vm1, %v1049_v37 }
 0x26c   : > { %v1641_v42 = vpop.f32.mrb[0].mxu1 }
 0x26d   : > { %v1644_v47 = vmul.f32 0.70710677, %v1641_v42  ;;  %v939_v19 = vpop.f32.mrb[1].mxu1 }
 0x26e   : > { %v1646_v20 = vpop.f32.mrb[2].mxu1 }
 0x26f   : > { %v600_v21 = vand.u32 2147483647, %v1644_v47  ;;  %v1650_v22 = vmul.f32 0.70710677, %v1646_v20  ;;  %v940_v50 = vpop.f32.mrb[3].mxu1  ;;  %vm708_vm8 = vcmp.ge.f32.partialorder %v1644_v47, 0.0 }
 0x270   : > { %v727_v47 = vmul.f32 0.5, %v1646_v20 }
 0x271   : > { %v606_v23 = vmul.f32 0.3275911, %v600_v21  ;;  %v601_v0 = vand.u32 2147483647, %v1650_v22  ;;  %v678_v32 = vsub.f32 0.0, %v600_v21  ;;  %vm709_vm9 = vcmp.ge.f32.partialorder %v1650_v22, 0.0 }
 0x273   : > { %v612_v13 = vadd.f32 1.0, %v606_v23  ;;  %v607_v25 = vmul.f32 0.3275911, %v601_v0  ;;  %v679_v51 = vsub.f32 0.0, %v601_v0  ;;  %v684_v54 = vmul.f32 %v678_v32, %v600_v21 }
 0x274   : > { %v1653_v26 = vpop.f32.mrb[4].mxu1 }
 0x275   : > { %1074 = vrcp.f32 %v612_v13  ;;  %v613_v30 = vadd.f32 1.0, %v607_v25  ;;  %v943_v33 = vpop.f32.mrb[5].mxu1  ;;  %v1656_v31 = vmul.f32 0.70710677, %v1653_v26  ;;  %v685_v27 = vmul.f32 %v679_v51, %v601_v0 }
 0x276   : > { %v1658_v14 = vpop.f32.mrb[6].mxu1  ;;  %v690_v24 = vmul.f32 1.442695, %v684_v54  ;;  %v1687_v51 = vstv %s268_s0 }
 0x277   : > { %v1661_v34 = vmul.f32 0.70710677, %v1658_v14  ;;  %v944_v35 = vpop.f32.mrb[7].mxu1  ;;  %1076 = vrcp.f32 %v613_v30  ;;  %v602_v36 = vand.u32 2147483647, %v1656_v31  ;;  %vm710_vm10 = vcmp.ge.f32.partialorder %v1656_v31, 0.0 }
 0x278   : > { %v692_v41 = vmul.f32 1.442695, %v685_v27 }
 0x279   : > { %v603_v38 = vand.u32 2147483647, %v1661_v34  ;;  %v608_v40 = vmul.f32 0.3275911, %v602_v36  ;;  %v680_v43 = vsub.f32 0.0, %v602_v36  ;;  %vm711_vm11 = vcmp.ge.f32.partialorder %v1661_v34, 0.0 }
 0x27b   : > { %v609_v44 = vmul.f32 0.3275911, %v603_v38  ;;  %v614_v18 = vadd.f32 1.0, %v608_v40  ;;  %v681_v6 = vsub.f32 0.0, %v603_v38  ;;  %v686_v17 = vmul.f32 %v680_v43, %v602_v36 }
 0x27c   : > { %v1665_v46 = vpop.f32.mrb[8].mxu1 }
 0x27d   : > { %v615_v16 = vadd.f32 1.0, %v609_v44  ;;  %v1668_v48 = vmul.f32 0.70710677, %v1665_v46  ;;  %v947_v49 = vpop.f32.mrb[9].mxu1  ;;  %1078 = vrcp.f32 %v614_v18  ;;  %v687_v21 = vmul.f32 %v681_v6, %v603_v38 }
 0x27e   : > { %v1670_v9 = vpop.f32.mrb[10].mxu1  ;;  %v694_v33 = vmul.f32 1.442695, %v686_v17  ;;  %v726_v6 = vmul.f32 0.5, %v1641_v42 }
 0x27f   : > { %v1075_v53 = vpop.eup %1074  ;;  %1080 = vrcp.f32 %v615_v16  ;;  %v604_v12 = vand.u32 2147483647, %v1668_v48  ;;  %v948_v55 = vpop.f32.mrb[11].mxu1  ;;  %v1674_v45 = vmul.f32 0.70710677, %v1670_v9  ;;  %vm712_vm12 = vcmp.ge.f32.partialorder %v1668_v48, 0.0 }
 0x280   : > { %v624_v56 = vmul.f32 1.0614054, %v1075_v53  ;;  %v696_v32 = vmul.f32 1.442695, %v687_v21 }
 0x281   : > { %v610_v58 = vmul.f32 0.3275911, %v604_v12  ;;  %v1077_v59 = vpop.eup %1076  ;;  %v605_v61 = vand.u32 2147483647, %v1674_v45  ;;  %v682_v50 = vsub.f32 0.0, %v604_v12  ;;  %vm713_vm13 = vcmp.ge.f32.partialorder %v1674_v45, 0.0 }
 0x282   : > { %v630_v60 = vadd.f32 -1.4531521, %v624_v56  ;;  %v625_v62 = vmul.f32 1.0614054, %v1077_v59 }
 0x283   : > { %v616_v63 = vadd.f32 1.0, %v610_v58  ;;  %v611_v29 = vmul.f32 0.3275911, %v605_v61  ;;  %v688_v44 = vmul.f32 %v682_v50, %v604_v12  ;;  %v683_v49 = vsub.f32 0.0, %v605_v61 }
 0x284   : > { %v636_v4 = vmul.f32 %v1075_v53, %v630_v60  ;;  %v631_v28 = vadd.f32 -1.4531521, %v625_v62 }
 0x285   : > { %1082 = vrcp.f32 %v616_v63  ;;  %v617_v11 = vadd.f32 1.0, %v611_v29  ;;  %v698_v12 = vmul.f32 1.442695, %v688_v44 }
 0x286   : > { %v642_v10 = vadd.f32 1.4214138, %v636_v4  ;;  %1084 = vpow2.f32 %v690_v24  ;;  %v637_v52 = vmul.f32 %v1077_v59, %v631_v28  ;;  %v689_v28 = vmul.f32 %v683_v49, %v605_v61 }
 0x287   : > { %v1677_v15 = vpop.eup %1078  ;;  %1086 = vrcp.f32 %v617_v11 }
 0x288   : > { %v648_v57 = vmul.f32 %v1075_v53, %v642_v10  ;;  %v643_v37 = vadd.f32 1.4214138, %v637_v52  ;;  %v626_v19 = vmul.f32 1.0614054, %v1677_v15  ;;  %1088 = vpow2.f32 %v692_v41 }
 0x289   : > { %v1679_v39 = vpop.eup %1080  ;;  %1090 = vpow2.f32 %v694_v33 }
 0x28a   : > { %v654_v23 = vadd.f32 -0.28449672, %v648_v57  ;;  %v627_v0 = vmul.f32 1.0614054, %v1679_v39  ;;  %v649_v13 = vmul.f32 %v1077_v59, %v643_v37  ;;  %v632_v25 = vadd.f32 -1.4531521, %v626_v19 }
 0x28b   : > { %1092 = vpow2.f32 %v696_v32 }
 0x28c   : > { %v660_v30 = vmul.f32 %v1075_v53, %v654_v23  ;;  %v633_v35 = vadd.f32 -1.4531521, %v627_v0  ;;  %v655_v40 = vadd.f32 -0.28449672, %v649_v13  ;;  %v638_v36 = vmul.f32 %v1677_v15, %v632_v25 }
 0x28d   : > { %1094 = vpow2.f32 %v698_v12 }
 0x28e   : > { %v666_v18 = vadd.f32 0.2548296, %v660_v30  ;;  %v639_v16 = vmul.f32 %v1679_v39, %v633_v35  ;;  %v661_v54 = vmul.f32 %v1077_v59, %v655_v40  ;;  %v644_v55 = vadd.f32 1.4214138, %v638_v36 }
 0x28f   : > { %v1685_v38 = vpop.eup %1082 }
 0x290   : > { %v672_v56 = vmul.f32 %v1075_v53, %v666_v18  ;;  %v645_v58 = vadd.f32 1.4214138, %v639_v16  ;;  %v628_v60 = vmul.f32 1.0614054, %v1685_v38  ;;  %v1085_v27 = vpop.eup %1084  ;;  %v667_v24 = vadd.f32 0.2548296, %v661_v54 }
 0x291   : > { %v650_v62 = vmul.f32 %v1677_v15, %v644_v55  ;;  %v1691_v63 = vpop.eup %1086 }
 0x292   : > { %v702_v4 = vmul.f32 %v1085_v27, %v672_v56  ;;  %v651_v43 = vmul.f32 %v1679_v39, %v645_v58  ;;  %v634_v29 = vadd.f32 -1.4531521, %v628_v60  ;;  %v673_v53 = vmul.f32 %v1077_v59, %v667_v24  ;;  %v1089_v11 = vpop.eup %1088 }
 0x293   : > { %v656_v10 = vadd.f32 -0.28449672, %v650_v62  ;;  %v629_v41 = vmul.f32 1.0614054, %v1691_v63  ;;  %v700_v59 = vmul.f32 1.442695, %v689_v28  ;;  %v1091_v44 = vpop.eup %1090 }
 0x294   : > { %v714_v52 = vsub.f32 2.0, %v702_v4  ;;  %v657_v57 = vadd.f32 -0.28449672, %v651_v43  ;;  %v640_v17 = vmul.f32 %v1685_v38, %v634_v29  ;;  %v703_v37 = vmul.f32 %v1089_v11, %v673_v53 }
 0x295   : > { %v662_v19 = vmul.f32 %v1677_v15, %v656_v10  ;;  %v635_v21 = vadd.f32 -1.4531521, %v629_v41  ;;  %1096 = vpow2.f32 %v700_v59  ;;  %v1093_v54 = vpop.eup %1092  ;;  %v729_v43 = vmul.f32 0.5, %v1658_v14 }
 0x296   : > { %v720_v50 = vsel %vm708_vm8, %v714_v52, %v702_v4  ;;  %v663_v61 = vmul.f32 %v1679_v39, %v657_v57  ;;  %v646_v42 = vadd.f32 1.4214138, %v640_v17  ;;  %v715_v0 = vsub.f32 2.0, %v703_v37 }
 0x297   : > { %v732_v23 = vmul.f32 %v726_v6, %v720_v50  ;;  %v668_v13 = vadd.f32 0.2548296, %v662_v19  ;;  %v641_v25 = vmul.f32 %v1691_v63, %v635_v21  ;;  %v1095_v12 = vpop.eup %1094 }
 0x298   : > { %v669_v30 = vadd.f32 0.2548296, %v663_v61  ;;  %v652_v33 = vmul.f32 %v1685_v38, %v646_v42  ;;  %v721_v40 = vsel %vm709_vm9, %v715_v0, %v703_v37 }
 0x299   : > { %v739_v35 = vmul.f32 %v1687_v51, %v732_v23  ;;  %v674_v36 = vmul.f32 %v1677_v15, %v668_v13  ;;  %v647_v32 = vadd.f32 1.4214138, %v641_v25  ;;  %v733_v18 = vmul.f32 %v727_v47, %v721_v40 }
 0x29a   : > { %v675_v16 = vmul.f32 %v1679_v39, %v669_v30  ;;  %v658_v49 = vadd.f32 -0.28449672, %v652_v33  ;;  %v728_v39 = vmul.f32 0.5, %v1653_v26 }
 0x29b   : > { %v745_v22 = vadd.f32 %v739_v35, %v1529_v1  ;;  %v704_v20 = vmul.f32 %v1091_v44, %v674_v36  ;;  %v653_v55 = vmul.f32 %v1691_v63, %v647_v32  ;;  %v740_v56 = vmul.f32 %v1687_v51, %v733_v18 }
 0x29c   : > { %v705_v58 = vmul.f32 %v1093_v54, %v675_v16  ;;  %v664_v60 = vmul.f32 %v1685_v38, %v658_v49 }
 0x29d   : > { %751 = vst [vmem:[%s1712_s26] sm:$0xff] %v745_v22  ;;  %v716_v15 = vsub.f32 2.0, %v704_v20  ;;  %v659_v27 = vadd.f32 -0.28449672, %v653_v55  ;;  %v746_v24 = vadd.f32 %v740_v56, %v1531_v2 }
 0x29e   : > { %v717_v1 = vsub.f32 2.0, %v705_v58  ;;  %v670_v62 = vadd.f32 0.2548296, %v664_v60 }
 0x29f   : > { %v722_v4 = vsel %vm710_vm10, %v716_v15, %v704_v20  ;;  %v665_v29 = vmul.f32 %v1691_v63, %v659_v27  ;;  %752 = vst [vmem:[%s1712_s26 + $0x8] sm:$0xff] %v746_v24  ;;  %v1097_v11 = vpop.eup %1096 }
 0x2a0   : > { %v734_v28 = vmul.f32 %v728_v39, %v722_v4  ;;  %v723_v6 = vsel %vm711_vm11, %v717_v1, %v705_v58  ;;  %v676_v26 = vmul.f32 %v1685_v38, %v670_v62  ;;  %v730_v38 = vmul.f32 0.5, %v1665_v46 }
 0x2a1   : > { %v735_v2 = vmul.f32 %v729_v43, %v723_v6  ;;  %v671_v53 = vadd.f32 0.2548296, %v665_v29 }
 0x2a2   : > { %v741_v31 = vmul.f32 %v1687_v51, %v734_v28  ;;  %v706_v10 = vmul.f32 %v1095_v12, %v676_v26 }
 0x2a3   : > { %v742_v41 = vmul.f32 %v1687_v51, %v735_v2  ;;  %v677_v34 = vmul.f32 %v1691_v63, %v671_v53 }
 0x2a4   : > { %v747_v14 = vadd.f32 %v741_v31, %v1533_v3  ;;  %v718_v52 = vsub.f32 2.0, %v706_v10  ;;  %v731_v3 = vmul.f32 0.5, %v1670_v9 }
 0x2a5   : > { %v748_v57 = vadd.f32 %v742_v41, %v1537_v5  ;;  %v707_v17 = vmul.f32 %v1097_v11, %v677_v34 }
 0x2a6   : > { %753 = vst [vmem:[%s1712_s26 + $0x10] sm:$0xff] %v747_v14  ;;  %v724_v37 = vsel %vm712_vm12, %v718_v52, %v706_v10 }
 0x2a7   : > { %754 = vst [vmem:[%s1712_s26 + $0x18] sm:$0xff] %v748_v57  ;;  %v736_v19 = vmul.f32 %v730_v38, %v724_v37  ;;  %v719_v63 = vsub.f32 2.0, %v707_v17 }
 0x2a9   : > { %v743_v5 = vmul.f32 %v1687_v51, %v736_v19  ;;  %v725_v21 = vsel %vm713_vm13, %v719_v63, %v707_v17 }
 0x2aa   : > { %v737_v48 = vmul.f32 %v731_v3, %v725_v21 }
 0x2ab   : > { %v749_v46 = vadd.f32 %v743_v5, %v1541_v7 }
 0x2ac   : > { %v744_v50 = vmul.f32 %v1687_v51, %v737_v48 }
 0x2ad   : > { %755 = vst [vmem:[%s1712_s26 + $0x20] sm:$0xff] %v749_v46 }
 0x2ae   : > { %v750_v9 = vadd.f32 %v744_v50, %v1544_v8 }
 0x2b0   : > { %756 = vst [vmem:[%s1712_s26 + $0x28] sm:$0xff] %v750_v9 }
 0x2b1   : > { %1197 = shalt.err (!%p1194_p1)
}
 0x2b2   : > { %s1198_s13 = scalar_lea.hbm %s1743_s24, 768  ;;  %s1202_s29 = scalar_lea.hbm %s1802_s4, 1536 }
 0x2b3   : > { %p1199_p6 = scmp.ne.s32.totalorder %s1743_s24, %s1198_s13  ;;  %p1203_p11 = scmp.lt.u32.totalorder %s1743_s24, %s1802_s4 }
 0x2b4   : > { %p1204_p3 = scmp.lt.u32.totalorder %s1202_s29, %s1198_s13  ;;  %p1206_p4 = scmp.lt.u32.totalorder %s1198_s13, %s1743_s24 }
 0x2b5   : > { %p1200_p9 = pnand %p1199_p6, %p1818_p7 }
 0x2b6   : > { %p1205_p12 = por %p1204_p3, %p1203_p11 }
 0x2b7   : > { %p1201_p13 = pneg %p1200_p9 }
 0x2b8   : > { %p1207_p10 = por %p1206_p4, %p1205_p12 }
 0x2ba   : > { %p1208_p2 = pnand %p1207_p10, %p1201_p13 }
 0x2bc   : > { %1211 = shalt.err (!%p1208_p2)
}
 0x2bd   : > { %s1286_s0 = smov 128   ;;  %s1287_s26 = smov 8  }
 0x2be   : > { %963 = dma.vmem_to_hbm [thread:$0]  (%p1818_p7), %s1745_s6, 768, %s1743_s24, %s1751_s20, %s1286_s0, %s1286_s0, %s1287_s26  }
 0x2bf PF: > { %s787_s14 = sand.u32 1, %s1254_s17   ;;  %p1819_p8 = scmp.ne.s32.totalorder %s1809_s28, 0 }
 0x2c0   : > { %p1820_p0 = scmp.ge.s32.totalorder %s1274_s22, 2  ;;  %s788_s15 = scalar_lea.sflag [#allocation5], %s787_s14 }
 0x2c2   : > { %p977_p5 = pnand %p1820_p0, %p1819_p8 }
 0x2c4   : > { %1249 = dma.done.wait (!%p977_p5), %s788_s15, 768  }
 0x2c5   : > { %1251 = vsyncadd (!%p977_p5), %s788_s15, 4294966528  ;;  %s20_s22 = sadd.s32 1, %s1274_s22   ;;  %s1821_s17 = smov %s1258_s18 }
 0x2c6   : > { %p17_p1 = scmp.ge.s32.totalorder %s20_s22, 4   ;;  %s1822_s18 = smov %s1262_s19 }
 0x2c7   : > { %s1823_s19 = smov %s1470_s5  ;;  %s1824_s20 = smov %s1270_s21 }
 0x2c8   : > { %s1825_s21 = smov %s1827_s11  ;;  %19 = sbr.rel (!%p17_p1) target bundleno = 8 (0x8), region = 88 }
 0x2cf   :  { %793 = vsyncpa [#allocation4], 1 }
 0x2d0   :  { %795 = vsyncpa [#allocation4 + $0x1], 1 }
 0x2d1   :  { %796 = vsyncpa [#allocation7], 1 }
 0x2d2   :  { %797 = vsyncpa [#allocation5], 1 }
 0x2d3   :  { %799 = vsyncpa [#allocation5 + $0x1], 1 }

</bundles_post_ra>
